<compile_context>
chip_gen: v7x
topology: tpu7x:2x2x1
jax: 0.10.0
libtpu: 0.0.40
codegen_flags: <defaults>
</compile_context>

<pallas_src>
import jax
import jax.numpy as jnp
from jax.experimental import pallas as pl
from jax.experimental.pallas import tpu as pltpu


def _hsigmoid_kernel(x_ref, o_ref):
    # relu6(x + 3) / 6  ==  clamp(x + 3, 0, 6) * (1/6)
    x = x_ref[...].astype(jnp.float32)   # no-op for f32 inputs
    y = jnp.clip(x + 3.0, 0.0, 6.0) * (1.0 / 6.0)
    o_ref[...] = y.astype(o_ref.dtype)


def _pick_lanes(total):
    """Widest lane width (multiple of 128) dividing `total` -> unmasked vst."""
    for cand in (4096, 2048, 1024, 512, 256, 128):
        if total % cand == 0:
            return cand
    return 128


def _hsigmoid_2d(x2d):
    """Run the Pallas kernel on a lane-dense (rows, lanes) slab."""
    rows, lanes = x2d.shape
    itemsize = jnp.dtype(x2d.dtype).itemsize

    # ~4 MiB of data per tile regardless of dtype; double-buffered in+out is
    # ~16 MiB, safely under the 32 MiB vmem budget below on every generation.
    target_tile_elems = max(lanes, (4 << 20) // itemsize)
    tr = max(1, target_tile_elems // lanes)
    tr = min(tr, rows)
    if tr < rows:
        # Partial row-block: keep it sublane-aligned (multiple of 8).
        tr = max(8, (tr // 8) * 8)

    # v7x has 2 TensorCores per chip; make sure the "parallel" axis has at
    # least 2 steps when the row count allows it (free on v5e/v6e).
    if -(-rows // tr) < 2 and rows >= 16:
        tr = max(8, ((rows // 2) // 8) * 8)

    grid = (pl.cdiv(rows, tr),)
    return pl.pallas_call(
        _hsigmoid_kernel,
        out_shape=jax.ShapeDtypeStruct((rows, lanes), x2d.dtype),
        grid=grid,
        in_specs=[pl.BlockSpec((tr, lanes), lambda i: (i, 0))],
        out_specs=pl.BlockSpec((tr, lanes), lambda i: (i, 0)),
        compiler_params=pltpu.CompilerParams(
            dimension_semantics=("parallel",),
            vmem_limit_bytes=32 * 1024 * 1024,
        ),
    )(x2d)


def _hsigmoid_jnp(x):
    # Pure-JAX path, matches torch: relu6(x + 3) / 6.
    xf = x.astype(jnp.float32)
    return (jnp.clip(xf + 3.0, 0.0, 6.0) / 6.0).astype(x.dtype)


def hsigmoid(x: jax.Array) -> jax.Array:
    """Elementwise Hardsigmoid. Accepts any shape; hot path runs in Pallas."""
    orig_shape = x.shape
    total = x.size
    if total == 0:
        return x

    x_flat = x.reshape(-1)
    rem = total % 128

    if rem == 0:
        # Common fast path: free bitcast reshape to a lane-dense 2D slab.
        lanes = _pick_lanes(total)
        out2d = _hsigmoid_2d(x_flat.reshape(total // lanes, lanes))
        return out2d.reshape(orig_shape)

    bulk = total - rem
    if bulk == 0:
        # Fewer than 128 elements: a kernel launch isn't worth it.
        return _hsigmoid_jnp(x_flat).reshape(orig_shape)

    # Ragged path: Pallas on the 128-aligned bulk, plain jnp on the tiny tail.
    lanes = _pick_lanes(bulk)
    bulk_out = _hsigmoid_2d(x_flat[:bulk].reshape(bulk // lanes, lanes))
    tail_out = _hsigmoid_jnp(x_flat[bulk:])
    return jnp.concatenate([bulk_out.reshape(-1), tail_out]).reshape(orig_shape)


if __name__ == "__main__":
    key = jax.random.PRNGKey(0)
    # NCHW, matching PyTorch conv-style inputs
    x = jax.random.normal(key, (2, 4, 16, 16), dtype=jnp.float32) * 3.0

    hsig = jax.jit(hsigmoid)
    y = jax.block_until_ready(hsig(x))

    y_ref = _hsigmoid_jnp(x)
    assert y.shape == x.shape and y.dtype == x.dtype
    assert jnp.allclose(y, y_ref, atol=1e-6, rtol=1e-6)
    print("KERNEL_OK")
</pallas_src>

<mosaic_0001>
module attributes {stable_mosaic.version = 11 : i64} {
  func.func @_hsigmoid_kernel(%arg0: i32, %arg1: memref<1x2048xf32, #tpu.memory_space<vmem>>, %arg2: memref<1x2048xf32, #tpu.memory_space<vmem>>) attributes {dimension_semantics = [#tpu.dimension_semantics<parallel>], iteration_bounds = array<i64: 1>, scalar_prefetch = 0 : i64, scratch_operands = 0 : i64, tpu.core_type = #tpu.core_type<tc>, window_params = [{transform_indices = @transform_0, window_bounds = array<i64: 1, 2048>}, {transform_indices = @transform_1, window_bounds = array<i64: 1, 2048>}]} {
    %c0 = arith.constant 0 : index
    %c0_0 = arith.constant 0 : index
    %0 = vector.load %arg1[%c0, %c0_0] : memref<1x2048xf32, #tpu.memory_space<vmem>>, vector<1x2048xf32>
    %cst = arith.constant 3.000000e+00 : f32
    %1 = vector.broadcast %cst : f32 to vector<1x2048xf32>
    %2 = arith.addf %0, %1 : vector<1x2048xf32>
    %cst_1 = arith.constant 0.000000e+00 : f32
    %cst_2 = arith.constant 6.000000e+00 : f32
    %3 = vector.broadcast %cst_1 : f32 to vector<1x2048xf32>
    %4 = arith.maximumf %3, %2 : vector<1x2048xf32>
    %5 = vector.broadcast %cst_2 : f32 to vector<1x2048xf32>
    %6 = arith.minimumf %5, %4 : vector<1x2048xf32>
    %cst_3 = arith.constant 0.166666672 : f32
    %7 = vector.broadcast %cst_3 : f32 to vector<1x2048xf32>
    %8 = arith.mulf %6, %7 : vector<1x2048xf32>
    %c0_4 = arith.constant 0 : index
    %c0_5 = arith.constant 0 : index
    %9 = vector.load %arg2[%c0_4, %c0_5] : memref<1x2048xf32, #tpu.memory_space<vmem>>, vector<1x2048xf32>
    tpu.vector_store %arg2[%c0_4, %c0_5], %8 {strides = array<i32>} : memref<1x2048xf32, #tpu.memory_space<vmem>>, vector<1x2048xf32>,
    return
  }
  func.func @transform_0(%arg0: i32) -> (i32, i32) {
    %c0_i32 = arith.constant 0 : i32
    %c0_i32_0 = arith.constant 0 : i32
    return %arg0, %c0_i32 : i32, i32
  }
  func.func @transform_1(%arg0: i32) -> (i32, i32) {
    %c0_i32 = arith.constant 0 : i32
    %c0_i32_0 = arith.constant 0 : i32
    return %arg0, %c0_i32 : i32, i32
  }
}

</mosaic_0001>

<bundles_post_ra>
// kernel: hsigmoid.1
= control target key start
LH: loop header
LB: loop body
LE: loop exit
PB: predicated region body
PF: predicated region fallthrough
CT: control target
= control target key end

     0   :  { %s46_s0 = inlined_call_operand.vmem [shape: f32[1,2048], index: 0, kind: input, shape index: {}]   ;;  %s47_s1 = inlined_call_operand.vmem [shape: f32[1,2048], index: 1, kind: output, shape index: {}]  }
   0x1   :  { %v8_v0 = vld [vmem:[%s46_s0] sm:$0xff]  ;;  %v9_v1 = vld [vmem:[%s46_s0 + $0x8] sm:$0xff] }
   0x2   :  { %v10_v2 = vadd.f32 3.0, %v8_v0  ;;  %v11_v3 = vadd.f32 3.0, %v9_v1 }
   0x4   :  { %v12_v4 = vmax.f32 %v10_v2, 0.0  ;;  %v13_v5 = vmax.f32 %v11_v3, 0.0 }
   0x6   :  { %v14_v6 = vmin.f32 %v12_v4, 6.0  ;;  %v15_v7 = vmin.f32 %v13_v5, 6.0 }
   0x8   :  { %v16_v8 = vmul.f32 0.16666667, %v14_v6  ;;  %v17_v9 = vmul.f32 0.16666667, %v15_v7 }
   0xa   :  { %18 = vst [vmem:[%s47_s1] sm:$0xff] %v16_v8  ;;  %19 = vst [vmem:[%s47_s1 + $0x8] sm:$0xff] %v17_v9 }

</bundles_post_ra>
